<compile_context>
chip_gen: v5e
topology: v5e:2x2
jax: 0.10.0
libtpu: 0.0.40
codegen_flags: <defaults>
</compile_context>

<pallas_src>
import functools

import jax
import jax.numpy as jnp
from jax.experimental import pallas as pl
from jax.experimental.pallas import tpu as pltpu


# ---------------------------------------------------------------------------
# VMEM budgeting (generation aware).
# ---------------------------------------------------------------------------
def _vmem_caps():
    """Returns (planning_budget_bytes, compiler_vmem_limit_bytes)."""
    try:
        info = pltpu.get_tpu_info()
        cap = int(getattr(info, "vmem_capacity_bytes", 64 << 20))
    except Exception:  # pragma: no cover - be conservative if query unavailable
        cap = 64 << 20
    budget = int(cap * 0.45)   # what we plan tiles / fusion against (headroom below limit)
    limit = int(cap * 0.60)    # scoped-VMEM cap handed to the Mosaic compiler
    return budget, limit


def _pick_tile_n(c, n, budget_bytes, max_tile=4096):
    """Largest lane-dense (multiple-of-128) N tile whose phase-2 footprint fits VMEM.

    Phase 2 dominates: x tile + out tile (each double-buffered) + (C, C) attention
    (double-buffered) + ~2 MiB slack for intermediates.
    """
    avail = budget_bytes - 8 * c * c * 4 - (2 << 20)
    t = avail // (16 * c)
    t = min(t, max_tile)
    if t >= n:
        return n                     # single full-extent block along N
    return max((t // 128) * 128, 128)


# ---------------------------------------------------------------------------
# Fused kernel: energy + softmax + gamma + apply + residual, X resident in VMEM.
# ---------------------------------------------------------------------------
def _fused_kernel(gamma_ref, x_ref, out_ref):
    x = x_ref[0]                                                   # (C, N), N on lanes
    # energy = X @ X^T (contract the lane/N axis on the MXU, f32 accumulate)
    energy = jax.lax.dot_general(
        x, x, (((1,), (1,)), ((), ())), preferred_element_type=jnp.float32)
    # softmax(rowmax(E) - E) == softmax(-E); stabilize with a single max-subtract.
    e = -energy
    e = e - jnp.max(e, axis=-1, keepdims=True)
    ex = jnp.exp(e)
    att = ex * pl.reciprocal(jnp.sum(ex, axis=-1, keepdims=True))  # exact: tiny (C,1) tile
    att = gamma_ref[0] * att                                       # fold gamma into (C,C)
    out_ref[0] = jnp.dot(att, x, preferred_element_type=jnp.float32) + x


# ---------------------------------------------------------------------------
# Two-phase fallback (large C*N): phase 1 accumulates energy over N tiles.
# ---------------------------------------------------------------------------
def _energy_softmax_kernel(gamma_ref, x_ref, att_ref, *, tile_n, tail_valid):
    nt_idx = pl.program_id(1)
    last = pl.num_programs(1) - 1

    @pl.when(nt_idx == 0)
    def _init():
        att_ref[...] = jnp.zeros_like(att_ref)

    xt = x_ref[0]                                                  # (C, tile_n)
    if tail_valid is not None:
        # Zero the padded tail columns of the last (partial) tile before accumulating.
        col = jax.lax.broadcasted_iota(jnp.int32, xt.shape, 1)
        valid = jnp.where(nt_idx == last, tail_valid, tile_n)
        xt = jnp.where(col < valid, xt, 0.0)

    att_ref[0] += jax.lax.dot_general(
        xt, xt, (((1,), (1,)), ((), ())), preferred_element_type=jnp.float32)

    @pl.when(nt_idx == last)
    def _finalize():
        energy = att_ref[0]                                        # (C, C)
        e = -energy                                                # == rowmax(E) - E (shift-inv.)
        e = e - jnp.max(e, axis=-1, keepdims=True)
        ex = jnp.exp(e)
        att = ex * pl.reciprocal(jnp.sum(ex, axis=-1, keepdims=True))
        att_ref[0] = gamma_ref[0] * att                            # fold gamma here


def _apply_kernel(att_ref, x_ref, out_ref):
    # Padded tail columns of a partial tile produce padded output columns, which the
    # pipeline discards on store, so no mask is needed here.
    xt = x_ref[0]                                                  # (C, tile_n)
    att = att_ref[0]                                               # (C, C), gamma-scaled
    out_ref[0] = jnp.dot(att, xt, preferred_element_type=jnp.float32) + xt


# ---------------------------------------------------------------------------
# Wrapper.
# ---------------------------------------------------------------------------
def channel_attention(x_nchw, gamma, *, fuse=None, tile_n=None):
    """x_nchw: (B, C, H, W); gamma: scalar. Returns (B, C, H, W) float32."""
    b, c, h, w = x_nchw.shape
    n = h * w
    x = x_nchw.reshape(b, c, n).astype(jnp.float32)     # free, contiguous reshape
    gamma1 = jnp.asarray(gamma, jnp.float32).reshape(1)

    budget, vmem_limit = _vmem_caps()

    # Fused footprint: x in + out (double-buffered) + (C,C) intermediates + slack.
    fused_bytes = 16 * c * n + 24 * c * c + (2 << 20)
    if fuse is None:
        fuse = fused_bytes <= budget

    if fuse:
        out = pl.pallas_call(
            _fused_kernel,
            out_shape=jax.ShapeDtypeStruct((b, c, n), jnp.float32),
            grid=(b,),
            in_specs=[
                pl.BlockSpec(memory_space=pltpu.SMEM),                 # gamma (1,)
                pl.BlockSpec((1, c, n), lambda i: (i, 0, 0)),          # full per-batch slab
            ],
            out_specs=pl.BlockSpec((1, c, n), lambda i: (i, 0, 0)),
            compiler_params=pltpu.CompilerParams(
                dimension_semantics=("parallel",),
                vmem_limit_bytes=vmem_limit),
        )(gamma1, x)
        return out.reshape(b, c, h, w)

    # ---------------- two-phase fallback ----------------
    if tile_n is None:
        tile_n = _pick_tile_n(c, n, budget)
    nt = pl.cdiv(n, tile_n)
    rem = n % tile_n
    tail_valid = rem if rem else None

    energy_kernel = functools.partial(
        _energy_softmax_kernel, tile_n=tile_n, tail_valid=tail_valid)

    # Phase 1: attention = gamma * softmax(-energy), energy = X X^T, resident (C,C) acc.
    att = pl.pallas_call(
        energy_kernel,
        out_shape=jax.ShapeDtypeStruct((b, c, c), jnp.float32),
        grid=(b, nt),
        in_specs=[
            pl.BlockSpec(memory_space=pltpu.SMEM),                     # gamma (1,)
            pl.BlockSpec((1, c, tile_n), lambda i, j: (i, 0, j)),      # x N-tile
        ],
        out_specs=pl.BlockSpec((1, c, c), lambda i, j: (i, 0, 0)),     # resident accumulator
        compiler_params=pltpu.CompilerParams(
            dimension_semantics=("parallel", "arbitrary"),
            vmem_limit_bytes=vmem_limit),
    )(gamma1, x)

    # Phase 2: out_tile = att @ x_tile + x_tile (lane-dense stores, fully parallel grid).
    out = pl.pallas_call(
        _apply_kernel,
        out_shape=jax.ShapeDtypeStruct((b, c, n), jnp.float32),
        grid=(b, nt),
        in_specs=[
            pl.BlockSpec((1, c, c), lambda i, j: (i, 0, 0)),           # attention
            pl.BlockSpec((1, c, tile_n), lambda i, j: (i, 0, j)),      # x N-tile
        ],
        out_specs=pl.BlockSpec((1, c, tile_n), lambda i, j: (i, 0, j)),
        compiler_params=pltpu.CompilerParams(
            dimension_semantics=("parallel", "parallel"),
            vmem_limit_bytes=vmem_limit),
    )(att, x)

    return out.reshape(b, c, h, w)


def reference_forward(x, gamma):
    """Pure-JAX mirror of the PyTorch ChannelAttentionModule.forward (NCHW)."""
    b, c, h, w = x.shape
    xp = x.reshape(b, c, h * w)
    energy = jnp.einsum('bcn,bdn->bcd', xp, xp,
                        precision=jax.lax.Precision.HIGHEST)
    energy_new = jnp.max(energy, axis=-1, keepdims=True) - energy
    attention = jax.nn.softmax(energy_new, axis=-1)
    out = jnp.einsum('bcd,bdn->bcn', attention, xp,
                     precision=jax.lax.Precision.HIGHEST)
    return gamma * out.reshape(b, c, h, w) + x


if __name__ == "__main__":
    key = jax.random.PRNGKey(0)
    # The module initializes gamma to 0 (identity forward); use 0.5 so the attention
    # path is actually exercised.
    gamma = jnp.float32(0.5)

    def _check(out, ref):
        # The softmax over O(N)-magnitude energies amplifies tiny f32 accumulation-order
        # differences between the MXU kernel and the XLA reference, hence 1e-3 tolerance.
        assert out.shape == ref.shape, (out.shape, ref.shape)
        assert jnp.allclose(out, ref, rtol=1e-3, atol=1e-3), (
            float(jnp.max(jnp.abs(out - ref))))

    # 1) Default path: fused single-pass kernel (slab fits VMEM at this size).
    B, C, H, W = 2, 32, 16, 16
    x = jax.random.normal(key, (B, C, H, W), dtype=jnp.float32)
    ref = jax.block_until_ready(reference_forward(x, gamma))
    out = jax.block_until_ready(channel_attention(x, gamma))
    _check(out, ref)

    # 2) Forced two-phase fallback on the same input (nt == 1, full-extent tile).
    out2 = jax.block_until_ready(channel_attention(x, gamma, fuse=False))
    _check(out2, ref)

    # 3) Forced two-phase fallback with a non-dividing N (masked tail tile): N = 144.
    x3 = jax.random.normal(jax.random.PRNGKey(1), (B, C, 12, 12), dtype=jnp.float32)
    ref3 = jax.block_until_ready(reference_forward(x3, gamma))
    out3 = jax.block_until_ready(channel_attention(x3, gamma, fuse=False, tile_n=128))
    _check(out3, ref3)

    print("KERNEL_OK")
</pallas_src>

<mosaic_0001>
module attributes {stable_mosaic.version = 11 : i64} {
  func.func @_fused_kernel(%arg0: i32, %arg1: memref<1xf32, #tpu.memory_space<smem>>, %arg2: memref<1x32x256xf32, #tpu.memory_space<vmem>>, %arg3: memref<1x32x256xf32, #tpu.memory_space<vmem>>) attributes {dimension_semantics = [#tpu.dimension_semantics<parallel>], iteration_bounds = array<i64: 2>, scalar_prefetch = 0 : i64, scratch_operands = 0 : i64, tpu.core_type = #tpu.core_type<tc>, window_params = [{transform_indices = @transform_0, window_bounds = array<i64: 1>}, {transform_indices = @transform_1, window_bounds = array<i64: 1, 32, 256>}, {transform_indices = @transform_2, window_bounds = array<i64: 1, 32, 256>}]} {
    %c0 = arith.constant 0 : index
    %c0_0 = arith.constant 0 : index
    %c0_1 = arith.constant 0 : index
    %0 = vector.load %arg2[%c0, %c0_0, %c0_1] : memref<1x32x256xf32, #tpu.memory_space<vmem>>, vector<1x32x256xf32>
    %1 = vector.shape_cast %0 : vector<1x32x256xf32> to vector<32x256xf32>
    %cst = arith.constant dense<0.000000e+00> : vector<32x32xf32>
    %2 = tpu.matmul %1, %1, %cst {dimension_numbers = #tpu.dot_dimension_numbers<[1], [1], [0], [0], [0, 0, 1, 0], [], []>} : vector<32x256xf32>, vector<32x256xf32>, vector<32x32xf32> -> vector<32x32xf32>
    %cst_2 = arith.constant 0.000000e+00 : f32
    %3 = vector.broadcast %cst_2 : f32 to vector<32x32xf32>
    %4 = arith.subf %3, %2 : vector<32x32xf32>
    %cst_3 = arith.constant dense<0xFF800000> : vector<32xf32>
    %5 = vector.multi_reduction <maximumf>, %4, %cst_3 [1] : vector<32x32xf32> to vector<32xf32>
    %6 = vector.shape_cast %5 : vector<32xf32> to vector<32x1xf32>
    %7 = vector.broadcast %6 : vector<32x1xf32> to vector<32x32xf32>
    %8 = arith.subf %4, %7 : vector<32x32xf32>
    %9 = math.exp %8 : vector<32x32xf32>
    %cst_4 = arith.constant dense<0.000000e+00> : vector<32xf32>
    %10 = vector.multi_reduction <add>, %9, %cst_4 [1] : vector<32x32xf32> to vector<32xf32>
    %11 = vector.shape_cast %10 : vector<32xf32> to vector<32x1xf32>
    %12 = tpu.reciprocal %11 : vector<32x1xf32> -> vector<32x1xf32>
    %13 = vector.broadcast %12 : vector<32x1xf32> to vector<32x32xf32>
    %14 = arith.mulf %9, %13 : vector<32x32xf32>
    %c0_5 = arith.constant 0 : index
    %15 = memref.load %arg1[%c0_5] : memref<1xf32, #tpu.memory_space<smem>>
    %16 = vector.broadcast %15 : f32 to vector<32x32xf32>
    %17 = arith.mulf %16, %14 : vector<32x32xf32>
    %cst_6 = arith.constant dense<0.000000e+00> : vector<32x256xf32>
    %18 = tpu.matmul %17, %1, %cst_6 {dimension_numbers = #tpu.dot_dimension_numbers<[1], [0], [0], [1], [0, 0, 1, 1], [], []>} : vector<32x32xf32>, vector<32x256xf32>, vector<32x256xf32> -> vector<32x256xf32>
    %19 = arith.addf %18, %1 : vector<32x256xf32>
    %c0_7 = arith.constant 0 : index
    %c0_8 = arith.constant 0 : index
    %c0_9 = arith.constant 0 : index
    %20 = vector.load %arg3[%c0_7, %c0_8, %c0_9] : memref<1x32x256xf32, #tpu.memory_space<vmem>>, vector<1x32x256xf32>
    %21 = vector.shape_cast %20 : vector<1x32x256xf32> to vector<32x256xf32>
    %22 = vector.shape_cast %19 : vector<32x256xf32> to vector<1x32x256xf32>
    tpu.vector_store %arg3[%c0_7, %c0_8, %c0_9], %22 {strides = array<i32>} : memref<1x32x256xf32, #tpu.memory_space<vmem>>, vector<1x32x256xf32>,
    return
  }
  func.func @transform_0(%arg0: i32) -> i32 {
    %c0_i32 = arith.constant 0 : i32
    %c0_i32_0 = arith.constant 0 : i32
    return %c0_i32 : i32
  }
  func.func @transform_1(%arg0: i32) -> (i32, i32, i32) {
    %c0_i32 = arith.constant 0 : i32
    %c0_i32_0 = arith.constant 0 : i32
    %c0_i32_1 = arith.constant 0 : i32
    return %arg0, %c0_i32, %c0_i32_0 : i32, i32, i32
  }
  func.func @transform_2(%arg0: i32) -> (i32, i32, i32) {
    %c0_i32 = arith.constant 0 : i32
    %c0_i32_0 = arith.constant 0 : i32
    %c0_i32_1 = arith.constant 0 : i32
    return %arg0, %c0_i32, %c0_i32_0 : i32, i32, i32
  }
}

</mosaic_0001>

<bundles_post_ra>
// kernel: tpu_custom_call.1
= control target key start
LH: loop header
LB: loop body
LE: loop exit
PB: predicated region body
PF: predicated region fallthrough
CT: control target
= control target key end

     0   :  { %s918_s0 = inlined_call_operand.<no memory space> [shape: f32[1], index: 0, kind: input, shape index: {}]   ;;  %s919_s1 = inlined_call_operand.hbm [shape: f32[2,32,256], index: 1, kind: input, shape index: {}]   ;;  %s920_s2 = inlined_call_operand.hbm [shape: f32[2,32,256], index: 2, kind: output, shape index: {}]  }
   0x1   :  { %7 = sst [smem:[#allocation2]] %s918_s0 }
   0x2   :  { %8 = vsyncpa [#allocation4], 0 }
   0x3   :  { %10 = vsyncpa [#allocation4 + $0x1], 0 }
   0x4   :  { %11 = vsyncpa [#allocation5], 0 }
   0x5   :  { %13 = vsyncpa [#allocation5 + $0x1], 0  ;;  %s715_s11 = smov 0   ;;  %s717_s12 = smov 0  }
   0x6   :  { %s719_s13 = smov 0   ;;  %s721_s14 = smov 0  }
   0x7 LB: > { %s736_s0 = sadd.s32 4294967295, %s691_s14   ;;  %s505_s15 = sadd.s32 4294967294, %s691_s14   ;;  %s691_s14 = sphi %s721_s14, %s930_s14   ;;  %s687_s13 = sphi %s719_s13, %s929_s13   ;;  %s683_s12 = sphi %s717_s12, %s928_s12   ;;  %s679_s11 = sphi %s715_s11, %s927_s11  }
   0x8   : > { %s740_s16 = sadd.s32 1, %s691_s14   ;;  %s47_s17 = sadd.s32 1, %s687_s13 }
   0x9   : > { %s44_s18 = ssub.s32 %s691_s14, %s740_s16  ;;  %p54_p0 = scmp.ne.s32.totalorder %s687_s13, %s683_s12 }
   0xa   : > { %p45_p1 = scmp.eq.s32.totalorder %s44_s18, 0  ;;  %p55_p2 = scmp.eq.s32.totalorder %s691_s14, 0 }
   0xb   : > { %p60_p3 = scmp.ne.s32.totalorder %s683_s12, %s679_s11  ;;  %p61_p4 = scmp.eq.s32.totalorder %s736_s0, 0 }
   0xc   : > { %s752_s19 = scalar_select %p45_p1, %s687_s13, %s47_s17  }
   0xd   : > { %p754_p5 = por %p55_p2, %p54_p0  ;;  %p758_p6 = por %p61_p4, %p60_p3 }
   0xe   : > { %p84_p7 = scmp.eq.s32.totalorder %s736_s0, 1  ;;  %p90_p8 = scmp.eq.s32.totalorder %s505_s15, 1 }
   0xf   : > { %p541_p10 = scmp.lt.s32.totalorder %s691_s14, 2  ;;  %s113_s24 = sand.u32 1, %s687_s13  }
  0x10   : > { %p765_p11 = por %p84_p7, %p54_p0  ;;  %p769_p12 = por %p90_p8, %p60_p3 }
  0x11   : > { %s527_s25 = sshll.u32 %s691_s14, 6  ;;  %s508_s26 = sshll.u32 %s113_s24, 6 }
  0x12   : > { %s122_s29 = scalar_lea.hbm %s919_s1, %s527_s25  ;;  %s117_s3 = scalar_lea.vmem [#allocation3], %s508_s26 }
  0x13   : > { %s123_s30 = sshll.u32 %s122_s29, 4  ;;  %s125_s4 = sshll.u32 %s117_s3, 4  ;;  %s124_s30 = int_to_ptr.hbm [resolvable:$true] %s123_s30  ;;  %s126_s4 = int_to_ptr.vmem [resolvable:$true] %s125_s4 }
  0x14   : > { %p780_p13 = pnand %p541_p10, %p754_p5  ;;  %p511_p0 = scmp.ge.s32.totalorder %s691_s14, 1 }
  0x15   : > { %p133_p1 = scmp.lt.s32.totalorder %s691_s14, 3  ;;  %s114_s6 = scalar_lea.sflag [#allocation4], %s113_s24 }
  0x16   : > { %s595_s7 = sshra.s32 %s124_s30, 4  ;;  %p599_p3 = pneg %p780_p13  ;;  %s596_s7 = int_to_ptr.hbm [resolvable:$true] %s595_s7 }
  0x17   : > { %s597_s8 = scalar_lea.hbm %s596_s7, 64  ;;  %s602_s15 = scalar_lea.hbm %s919_s1, 128 }
  0x18   : > { %p598_p2 = scmp.ne.s32.totalorder %s596_s7, %s597_s8  ;;  %p603_p5 = scmp.lt.s32.totalorder %s596_s7, %s919_s1 }
  0x19   : > { %p604_p8 = scmp.lt.s32.totalorder %s602_s15, %s597_s8 }
  0x1a   : > { %p600_p4 = pnand %p599_p3, %p598_p2 }
  0x1b   : > { %p605_p10 = por %p604_p8, %p603_p5 }
  0x1c   : > { %p601_p7 = pneg %p600_p4 }
  0x1e   : > { %p606_p9 = pnand %p605_p10, %p601_p7 }
  0x20   : > { %609 = shalt.err (!%p606_p9)
}
  0x21   : > { %s693_s20 = smov 256   ;;  %s694_s24 = smov 16  }
  0x22   : > { %536 = dma.hbm_to_vmem [thread:$0]  (!%p780_p13), %s124_s30, 1024, %s126_s4, %s114_s6, %s693_s20, %s693_s20, %s694_s24  }
  0x23   : > { %p134_p2 = pnand %p511_p0, %p133_p1 }
  0x24   : > { %s801_s25 = sand.u32 (!%p134_p2), 1, %s683_s12  }
  0x25   : > { %137 = sbr.rel (%p134_p2) target bundleno = 618 (0x26a), region = 28  ;;  %s512_s26 = sshll.u32 (!%p134_p2), %s801_s25, 6 }
  0x26   : > { %s140_s27 = scalar_lea.sflag (!%p134_p2), [#allocation4], %s801_s25  ;;  %s143_s28 = scalar_lea.vmem (!%p134_p2), [#allocation3], %s512_s26 }
  0x2a   : > { %670 = dma.done.wait (%p758_p6), %s140_s27, 1024  }
  0x2b   : > { %672 = vsyncadd (%p758_p6), %s140_s27, 4294966272  ;;  %v811_v0 = vld [vmem:[%s143_s28 + $0x30] sm:$0xff]  ;;  %v813_v1 = vld [vmem:[%s143_s28 + $0x38] sm:$0xff]  ;;  %vm235_vm0 = vcmask 261120   ;;  %s332_s21 = sld [smem:[#allocation2]]  ;;  %s164_s29 = scalar_lea.vmem [#allocation6], %s512_s26 }
  0x2c   : > { %185 = vmatpush.xpose.msra.mxu0 %v811_v0  ;;  %214 = vmatpush.xpose.msra.mxu1 %v813_v1  ;;  %v817_v2 = vld [vmem:[%s143_s28 + $0x20] sm:$0xff]  ;;  %v819_v3 = vld [vmem:[%s143_s28 + $0x28] sm:$0xff]  ;;  %v827_v4 = vld [vmem:[%s143_s28 + $0x10] sm:$0xff]  ;;  %s528_s30 = sshll.u32 %s736_s0, 6  ;;  %s429_s6 = sshll.u32 %s164_s29, 4  ;;  %s430_s6 = int_to_ptr.vmem [resolvable:$true] %s429_s6 }
  0x2d   : > { %362 = vmatpush.msra.mxu2 %v811_v0  ;;  %391 = vmatpush.msra.mxu3 %v813_v1  ;;  %v829_v5 = vld [vmem:[%s143_s28 + $0x18] sm:$0xff]  ;;  %v833_v6 = vld [vmem:[%s143_s28] sm:$0xff]  ;;  %v835_v7 = vld [vmem:[%s143_s28 + $0x8] sm:$0xff]  ;;  %s428_s5 = scalar_lea.hbm %s920_s2, %s528_s30  ;;  %s417_s0 = scalar_lea.sflag [#allocation5], %s801_s25 }
  0x2e   : > { %s431_s7 = sshll.u32 %s428_s5, 4  ;;  %s645_s17 = scalar_lea.hbm %s920_s2, 128  ;;  %s432_s7 = int_to_ptr.hbm [resolvable:$true] %s431_s7 }
  0x2f   : > { %363 = vmatpush.msra.mxu2 %v817_v2  ;;  %392 = vmatpush.msra.mxu3 %v819_v3  ;;  %s639_s8 = sshra.s32 %s432_s7, 4  ;;  %s640_s8 = int_to_ptr.hbm [resolvable:$true] %s639_s8 }
  0x30   : > { %186 = vmatpush.xpose.msra.mxu0 %v817_v2  ;;  %215 = vmatpush.xpose.msra.mxu1 %v819_v3  ;;  %s641_s9 = scalar_lea.hbm %s640_s8, 64  ;;  %p646_p0 = scmp.lt.s32.totalorder %s640_s8, %s920_s2 }
  0x31   : > { %364 = vmatpush.msra.mxu2 %v827_v4  ;;  %393 = vmatpush.msra.mxu3 %v829_v5  ;;  %p642_p6 = scmp.ne.s32.totalorder %s640_s8, %s641_s9  ;;  %p647_p1 = scmp.lt.s32.totalorder %s645_s17, %s641_s9 }
  0x33   : > { %365 = vmatpush.msra.mxu2 %v833_v6  ;;  %394 = vmatpush.msra.mxu3 %v835_v7  ;;  %p643_p9 = pnand %p642_p6, %p765_p11  ;;  %p648_p3 = por %p647_p1, %p646_p0 }
  0x34   : > { %187 = vmatpush.xpose.msra.mxu0 %v827_v4  ;;  %216 = vmatpush.xpose.msra.mxu1 %v829_v5 }
  0x35   : > { %p644_p13 = pneg %p643_p9 }
  0x37   : > { %p649_p4 = pnand %p648_p3, %p644_p13 }
  0x38   : > { %188 = vmatpush.xpose.msra.mxu0 %v833_v6  ;;  %217 = vmatpush.xpose.msra.mxu1 %v835_v7 }
  0x3b   : > { %189 = vmatmul.f32.vlgmr.msra.gmra.mxu0 %v833_v6  ;;  %218 = vmatmul.f32.vlgmr.msra.gmra.mxu1 %v835_v7 }
  0x43   : > { %192 = vmatmul.f32.gmra.mxu0 %v827_v4  ;;  %221 = vmatmul.f32.gmra.mxu1 %v829_v5 }
  0x4b   : > { %195 = vmatmul.f32.gmra.mxu0 %v817_v2  ;;  %224 = vmatmul.f32.gmra.mxu1 %v819_v3 }
  0x53   : > { %198 = vmatmul.f32.gmra.mxu0 %v811_v0  ;;  %227 = vmatmul.f32.gmra.mxu1 %v813_v1 }
  0xb8   : > { %v190_v8 = vpop.f32.mrf.mxu0  ;;  %v219_v9 = vpop.f32.mrf.mxu1 }
  0xb9   : > { %v220_v10 = vadd.f32 %v219_v9, %v190_v8  ;;  %v333_v8 = vstv %s332_s21 }
  0xbb   : > { %v231_v11 = vsub.f32 0.0, %v220_v10 }
  0xbd   : > { %v236_v12 = vsel %vm235_vm0, %v231_v11, -inf }
  0xbe   : > { %237 = vmax.xlane.f32.xlu0 %v236_v12 }
  0xc0   : > { %v193_v13 = vpop.f32.mrf.mxu0  ;;  %v222_v14 = vpop.f32.mrf.mxu1 }
  0xc1   : > { %v223_v15 = vadd.f32 %v222_v14, %v193_v13 }
  0xc3   : > { %v232_v16 = vsub.f32 0.0, %v223_v15 }
  0xc5   : > { %v239_v17 = vsel %vm235_vm0, %v232_v16, -inf }
  0xc6   : > { %240 = vmax.xlane.f32.xlu0 %v239_v17 }
  0xc8   : > { %v196_v18 = vpop.f32.mrf.mxu0  ;;  %v225_v19 = vpop.f32.mrf.mxu1 }
  0xc9   : > { %v226_v20 = vadd.f32 %v225_v19, %v196_v18 }
  0xcb   : > { %v233_v21 = vsub.f32 0.0, %v226_v20 }
  0xcd   : > { %v242_v22 = vsel %vm235_vm0, %v233_v21, -inf }
  0xce   : > { %243 = vmax.xlane.f32.xlu1 %v242_v22 }
  0xd0   : > { %v199_v23 = vpop.f32.mrf.mxu0  ;;  %v228_v24 = vpop.f32.mrf.mxu1 }
  0xd1   : > { %v229_v25 = vadd.f32 %v228_v24, %v199_v23 }
  0xd3   : > { %v234_v26 = vsub.f32 0.0, %v229_v25 }
  0xd5   : > { %v245_v27 = vsel %vm235_vm0, %v234_v26, -inf }
  0xd6   : > { %246 = vmax.xlane.f32.xlu1 %v245_v27 }
 0x131   : > { %v238_v28 = vpop.xlane.xlu0 %237 }
 0x132   : > { %v248_v29 = vsub.f32 %v231_v11, %v238_v28 }
 0x134   : > { %v252_v30 = vmul.f32 1.442695, %v248_v29 }
 0x136   : > { %579 = vpow2.f32 %v252_v30 }
 0x139   : > { %v241_v31 = vpop.xlane.xlu0 %240 }
 0x13a   : > { %v249_v32 = vsub.f32 %v232_v16, %v241_v31 }
 0x13c   : > { %v580_v33 = vpop.eup %579  ;;  %v254_v34 = vmul.f32 1.442695, %v249_v32 }
 0x13d   : > { %v260_v35 = vsel %vm235_vm0, %v580_v33, 0.0 }
 0x13e   : > { %581 = vpow2.f32 %v254_v34  ;;  %261 = vadd.xlane.f32.xlu2 %v260_v35 }
 0x141   : > { %v244_v36 = vpop.xlane.xlu1 %243 }
 0x142   : > { %v250_v37 = vsub.f32 %v233_v21, %v244_v36 }
 0x144   : > { %v582_v38 = vpop.eup %581  ;;  %v256_v39 = vmul.f32 1.442695, %v250_v37 }
 0x145   : > { %v263_v40 = vsel %vm235_vm0, %v582_v38, 0.0 }
 0x146   : > { %583 = vpow2.f32 %v256_v39  ;;  %264 = vadd.xlane.f32.xlu2 %v263_v40 }
 0x149   : > { %v247_v41 = vpop.xlane.xlu1 %246 }
 0x14a   : > { %v251_v42 = vsub.f32 %v234_v26, %v247_v41 }
 0x14c   : > { %v857_v43 = vpop.eup %583  ;;  %v258_v44 = vmul.f32 1.442695, %v251_v42 }
 0x14d   : > { %v266_v45 = vsel %vm235_vm0, %v857_v43, 0.0 }
 0x14e   : > { %585 = vpow2.f32 %v258_v44  ;;  %267 = vadd.xlane.f32.xlu0 %v266_v45 }
 0x154   : > { %v861_v46 = vpop.eup %585 }
 0x155   : > { %v269_v47 = vsel %vm235_vm0, %v861_v46, 0.0 }
 0x156   : > { %270 = vadd.xlane.f32.xlu1 %v269_v47 }
 0x1b1   : > { %v262_v48 = vpop.xlane.xlu2 %261 }
 0x1b2   : > { %587 = vrcp.f32 %v262_v48  ;;  %v283_v54 = vand.u32 2147483648, %v262_v48  ;;  %v281_v55 = vand.u32 2147483647, %v262_v48  ;;  %vm277_vm2 = vweird.f32 %v262_v48 }
 0x1b4   : > { %v284_v58 = vor.u32 1.1754944e-38, %v283_v54  ;;  %vm282_vm4 = vcmp.eq.f32.partialorder %v281_v55, 8.507059e+37 }
 0x1b8   : > { %v588_v49 = vpop.eup %587 }
 0x1b9   : > { %v273_v50 = vmul.f32 %v588_v49, %v262_v48  ;;  %v265_v51 = vpop.xlane.xlu2 %264  ;;  %vm278_vm1 = vweird.f32 %v588_v49 }
 0x1ba   : > { %589 = vrcp.f32 %v265_v51  ;;  %vm279_vm3 = vmor %vm277_vm2, %vm278_vm1  ;;  %v297_v11 = vand.u32 2147483648, %v265_v51  ;;  %v295_v12 = vand.u32 2147483647, %v265_v51  ;;  %vm291_vm6 = vweird.f32 %v265_v51 }
 0x1bb   : > { %v274_v52 = vsub.f32 1.0, %v273_v50 }
 0x1bc   : > { %v298_v17 = vor.u32 1.1754944e-38, %v297_v11  ;;  %vm296_vm8 = vcmp.eq.f32.partialorder %v295_v12, 8.507059e+37 }
 0x1bd   : > { %v275_v53 = vmul.f32 %v588_v49, %v274_v52 }
 0x1bf   : > { %v276_v56 = vadd.f32 %v588_v49, %v275_v53 }
 0x1c0   : > { %v590_v57 = vpop.eup %589 }
 0x1c1   : > { %v287_v59 = vmul.f32 %v590_v57, %v265_v51  ;;  %v268_v60 = vpop.xlane.xlu0 %267  ;;  %v280_v61 = vsel %vm279_vm3, %v588_v49, %v276_v56  ;;  %vm292_vm5 = vweird.f32 %v590_v57 }
 0x1c2   : > { %591 = vrcp.f32 %v268_v60  ;;  %v285_v63 = vsel %vm282_vm4, %v284_v58, %v280_v61  ;;  %vm293_vm7 = vmor %vm291_vm6, %vm292_vm5  ;;  %v311_v22 = vand.u32 2147483648, %v268_v60  ;;  %v309_v25 = vand.u32 2147483647, %v268_v60 }
 0x1c3   : > { %v288_v62 = vsub.f32 1.0, %v287_v59  ;;  %v328_v9 = vmul.f32 %v580_v33, %v285_v63  ;;  %vm305_vm10 = vweird.f32 %v268_v60 }
 0x1c4   : > { %v312_v29 = vor.u32 1.1754944e-38, %v311_v22  ;;  %vm310_vm12 = vcmp.eq.f32.partialorder %v309_v25, 8.507059e+37 }
 0x1c5   : > { %v289_v10 = vmul.f32 %v590_v57, %v288_v62  ;;  %v334_v13 = vmul.f32 %v333_v8, %v328_v9 }
 0x1c7   : > { %v290_v14 = vadd.f32 %v590_v57, %v289_v10  ;;  %514 = vmatmul.msk.f32.vlgmr.msra.gmra.mxu2 %vm235_vm0, %v334_v13  ;;  %518 = vmatmul.msk.f32.vlgmr.msra.gmra.mxu3 %vm235_vm0, %v334_v13 }
 0x1c8   : > { %v592_v15 = vpop.eup %591 }
 0x1c9   : > { %v294_v16 = vsel %vm293_vm7, %v590_v57, %v290_v14  ;;  %v301_v18 = vmul.f32 %v592_v15, %v268_v60  ;;  %v271_v19 = vpop.xlane.xlu1 %270  ;;  %vm306_vm9 = vweird.f32 %v592_v15 }
 0x1ca   : > { %593 = vrcp.f32 %v271_v19  ;;  %v299_v21 = vsel %vm296_vm8, %v298_v17, %v294_v16  ;;  %vm307_vm11 = vmor %vm305_vm10, %vm306_vm9  ;;  %v325_v35 = vand.u32 2147483648, %v271_v19  ;;  %v323_v37 = vand.u32 2147483647, %v271_v19 }
 0x1cb   : > { %v302_v20 = vsub.f32 1.0, %v301_v18  ;;  %v329_v23 = vmul.f32 %v582_v38, %v299_v21  ;;  %vm319_vm14 = vweird.f32 %v271_v19 }
 0x1cc   : > { %v326_v40 = vor.u32 1.1754944e-38, %v325_v35  ;;  %vm324_vm1 = vcmp.eq.f32.partialorder %v323_v37, 8.507059e+37 }
 0x1cd   : > { %v303_v24 = vmul.f32 %v592_v15, %v302_v20  ;;  %v335_v26 = vmul.f32 %v333_v8, %v329_v23 }
 0x1cf   : > { %v304_v27 = vadd.f32 %v592_v15, %v303_v24  ;;  %515 = vmatmul.msk.f32.gmra.mxu2 %vm235_vm0, %v335_v26  ;;  %519 = vmatmul.msk.f32.gmra.mxu3 %vm235_vm0, %v335_v26 }
 0x1d0   : > { %v594_v28 = vpop.eup %593 }
 0x1d1   : > { %v308_v30 = vsel %vm307_vm11, %v592_v15, %v304_v27  ;;  %v315_v31 = vmul.f32 %v594_v28, %v271_v19  ;;  %vm320_vm13 = vweird.f32 %v594_v28 }
 0x1d2   : > { %v313_v32 = vsel %vm310_vm12, %v312_v29, %v308_v30  ;;  %vm321_vm15 = vmor %vm319_vm14, %vm320_vm13 }
 0x1d3   : > { %v316_v33 = vsub.f32 1.0, %v315_v31  ;;  %v330_v34 = vmul.f32 %v857_v43, %v313_v32 }
 0x1d5   : > { %v317_v36 = vmul.f32 %v594_v28, %v316_v33  ;;  %v336_v38 = vmul.f32 %v333_v8, %v330_v34 }
 0x1d7   : > { %v318_v39 = vadd.f32 %v594_v28, %v317_v36  ;;  %516 = vmatmul.msk.f32.gmra.mxu2 %vm235_vm0, %v336_v38  ;;  %520 = vmatmul.msk.f32.gmra.mxu3 %vm235_vm0, %v336_v38 }
 0x1d9   : > { %v322_v41 = vsel %vm321_vm15, %v594_v28, %v318_v39 }
 0x1da   : > { %v327_v42 = vsel %vm324_vm1, %v326_v40, %v322_v41 }
 0x1db   : > { %v331_v44 = vmul.f32 %v861_v46, %v327_v42 }
 0x1dd   : > { %v337_v43 = vmul.f32 %v333_v8, %v331_v44 }
 0x1df   : > { %517 = vmatmul.msk.f32.gmra.mxu2 %vm235_vm0, %v337_v43  ;;  %521 = vmatmul.msk.f32.gmra.mxu3 %vm235_vm0, %v337_v43 }
 0x24a   : > { %v367_v45 = vpop.f32.mrf.mxu2  ;;  %v396_v47 = vpop.f32.mrf.mxu3 }
 0x24b   : > { %v368_v48 = vadd.f32 %v367_v45, %v833_v6  ;;  %v397_v49 = vadd.f32 %v396_v47, %v835_v7 }
 0x24d   : > { %408 = vst [vmem:[%s164_s29] sm:$0xff] %v368_v48 }
 0x24e   : > { %409 = vst [vmem:[%s164_s29 + $0x8] sm:$0xff] %v397_v49 }
 0x252   : > { %v370_v50 = vpop.f32.mrf.mxu2  ;;  %v399_v51 = vpop.f32.mrf.mxu3 }
 0x253   : > { %v371_v46 = vadd.f32 %v370_v50, %v827_v4  ;;  %v400_v52 = vadd.f32 %v399_v51, %v829_v5 }
 0x255   : > { %410 = vst [vmem:[%s164_s29 + $0x10] sm:$0xff] %v371_v46 }
 0x256   : > { %411 = vst [vmem:[%s164_s29 + $0x18] sm:$0xff] %v400_v52 }
 0x25a   : > { %v373_v53 = vpop.f32.mrf.mxu2  ;;  %v402_v54 = vpop.f32.mrf.mxu3 }
 0x25b   : > { %v374_v6 = vadd.f32 %v373_v53, %v817_v2  ;;  %v403_v7 = vadd.f32 %v402_v54, %v819_v3 }
 0x25d   : > { %412 = vst [vmem:[%s164_s29 + $0x20] sm:$0xff] %v374_v6 }
 0x25e   : > { %413 = vst [vmem:[%s164_s29 + $0x28] sm:$0xff] %v403_v7 }
 0x262   : > { %v376_v4 = vpop.f32.mrf.mxu2  ;;  %v405_v5 = vpop.f32.mrf.mxu3 }
 0x263   : > { %v377_v55 = vadd.f32 %v376_v4, %v811_v0  ;;  %v406_v56 = vadd.f32 %v405_v5, %v813_v1 }
 0x265   : > { %414 = vst [vmem:[%s164_s29 + $0x30] sm:$0xff] %v377_v55 }
 0x266   : > { %415 = vst [vmem:[%s164_s29 + $0x38] sm:$0xff] %v406_v56 }
 0x267   : > { %652 = shalt.err (!%p649_p4)
}
 0x268   : > { %s695_s24 = smov 256   ;;  %s696_s25 = smov 16  }
 0x269   : > { %531 = dma.vmem_to_hbm [thread:$0]  (%p765_p11), %s430_s6, 1024, %s432_s7, %s417_s0, %s695_s24, %s695_s24, %s696_s25  }
 0x26a PF: > { %s446_s26 = sand.u32 1, %s679_s11   ;;  %p926_p7 = scmp.ge.s32.totalorder %s691_s14, 2 }
 0x26b   : > { %s447_s27 = scalar_lea.sflag [#allocation5], %s446_s26 }
 0x26c   : > { %p538_p5 = pnand %p926_p7, %p769_p12 }
 0x26e   : > { %p539_p8 = pneg %p538_p5 }
 0x270   : > { %674 = dma.done.wait (%p539_p8), %s447_s27, 1024  }
 0x271   : > { %676 = vsyncadd (%p539_p8), %s447_s27, 4294966272  ;;  %p16_p10 = scmp.ge.s32.totalorder %s740_s16, 4   ;;  %s927_s11 = smov %s683_s12 }
 0x272   : > { %s928_s12 = smov %s687_s13  ;;  %s929_s13 = smov %s752_s19 }
 0x273   : > { %s930_s14 = smov %s740_s16  ;;  %18 = sbr.rel (!%p16_p10) target bundleno = 7 (0x7), region = 73 }
 0x278   :  { %453 = vsyncpa [#allocation4], 1 }
 0x279   :  { %455 = vsyncpa [#allocation4 + $0x1], 1 }
 0x27a   :  { %456 = vsyncpa [#allocation5], 1 }
 0x27b   :  { %458 = vsyncpa [#allocation5 + $0x1], 1 }

</bundles_post_ra>
